<compile_context>
chip_gen: v6e
topology: v6e:2x2x1
jax: 0.10.0
libtpu: 0.0.40
codegen_flags: <defaults>
</compile_context>

<pallas_src>
import functools

import jax
import jax.numpy as jnp
import numpy as np
from jax.experimental import pallas as pl
from jax.experimental.pallas import tpu as pltpu


def _round_up(x, m):
    return ((x + m - 1) // m) * m


def residual_block_kernel(x_ref, xh_ref, w_di_ref, b_di_ref, w_so_ref, b_so_ref,
                          s_ref, z_ref, *, dilation, ksize):
    # x_ref : (1, L_TILE, Cp)  main time tile (padded-x rows t*L_TILE .. +L_TILE)
    # xh_ref: (1, HR, Cp)      halo rows immediately after the main tile
    # w_di  : (K*Cp, Op)       dilated-conv weight; tap k lives in rows [k*Cp, (k+1)*Cp)
    # w_so  : (Cp, 2*Op)       fused [skip | out] 1x1 weight
    xmain = x_ref[0]
    xhalo = xh_ref[0]
    cp = x_ref.shape[-1]
    op = s_ref.shape[-1]

    # Per-tap shifted views.  Tap 0 is exactly the main tile (no copy); tap
    # k >= 1 stitches the tail of the main tile with the first k*dilation halo
    # rows.  The last tap (offset halo = dilation*(K-1)) doubles as the residual
    # rows x[:, :, -L:] of the PyTorch module, so it is reused below for free.
    taps = [xmain]
    for k in range(1, ksize):
        off = k * dilation
        taps.append(jnp.concatenate([xmain[off:, :], xhalo[:off, :]], axis=0))

    # Dilated conv: K accumulated MXU matmuls with f32 accumulation.
    acc = jnp.dot(taps[0], w_di_ref[0:cp, :],
                  preferred_element_type=jnp.float32)
    for k in range(1, ksize):
        acc = acc + jnp.dot(taps[k], w_di_ref[k * cp:(k + 1) * cp, :],
                            preferred_element_type=jnp.float32)
    acc = acc + b_di_ref[...]

    # Gated activation tanh(a)*sigmoid(a) with a single EUP transcendental:
    #   u = exp(-a); tanh = (1-u^2)/(1+u^2); sigmoid = 1/(1+u).
    # Clip keeps u^3 finite in f32; abs error introduced by the clip is < 3e-9.
    a = jnp.clip(acc, -20.0, 20.0)
    u = jnp.exp(-a)
    uu = u * u
    g = (1.0 - uu) / ((1.0 + uu) * (1.0 + u))             # (L_TILE, Op), f32

    # Fused 1x1 convs: [skip | out] in one matmul -> (L_TILE, 2*Op).
    so = jnp.dot(g.astype(w_so_ref.dtype), w_so_ref[...],
                 preferred_element_type=jnp.float32) + b_so_ref[...]

    # Lane-aligned split (op is a multiple of 128) into the two outputs;
    # residual add only on the "out" half.
    x_tail = taps[ksize - 1].astype(jnp.float32)          # (L_TILE, Cp == Op)
    s_ref[0] = so[:, :op].astype(s_ref.dtype)
    z_ref[0] = (so[:, op:] + x_tail).astype(z_ref.dtype)


def residual_block_pallas(x_btc, w_di, b_di, w_so, b_so, *, dilation, l_tile, hr):
    """x_btc: (B, n_t*l_tile + hr, Cp) channel-last, already left/right padded.
       w_di: (K*Cp, Op); b_di: (1, Op); w_so: (Cp, 2*Op); b_so: (1, 2*Op).
       Returns (s_out, z_out), each (B, n_t*l_tile, Op) f32."""
    B, t_tot, Cp = x_btc.shape
    KCp, Op = w_di.shape
    K = KCp // Cp
    n_t = (t_tot - hr) // l_tile
    halo_blocks = l_tile // hr        # hr divides l_tile by construction

    kernel = functools.partial(residual_block_kernel, dilation=dilation, ksize=K)
    out_sds = jax.ShapeDtypeStruct((B, n_t * l_tile, Op), jnp.float32)

    return pl.pallas_call(
        kernel,
        out_shape=(out_sds, out_sds),
        grid=(B, n_t),
        in_specs=[
            pl.BlockSpec((1, l_tile, Cp), lambda b, t: (b, t, 0)),
            # Halo: the first HR rows of the NEXT time tile (element offset
            # (t+1)*l_tile == block index (t+1)*halo_blocks in HR-sized blocks).
            pl.BlockSpec((1, hr, Cp), lambda b, t: (b, (t + 1) * halo_blocks, 0)),
            pl.BlockSpec((KCp, Op), lambda b, t: (0, 0)),
            pl.BlockSpec((1, Op), lambda b, t: (0, 0)),
            pl.BlockSpec((Cp, 2 * Op), lambda b, t: (0, 0)),
            pl.BlockSpec((1, 2 * Op), lambda b, t: (0, 0)),
        ],
        out_specs=(
            pl.BlockSpec((1, l_tile, Op), lambda b, t: (b, t, 0)),   # skip
            pl.BlockSpec((1, l_tile, Op), lambda b, t: (b, t, 0)),   # out
        ),
        compiler_params=pltpu.CompilerParams(
            dimension_semantics=("parallel", "parallel"),
            # Explicit VMEM budget: footprint at l_tile=512, C=128 is a few MiB;
            # 32 MiB leaves headroom on every generation (v7x physical VMEM is
            # 64 MiB -- re-derive if l_tile / channel counts are scaled up).
            vmem_limit_bytes=32 * 1024 * 1024),
    )(x_btc, x_btc, w_di, b_di, w_so, b_so)


def residual_block_forward(x_ncw, params, *, dilation, l_tile=512,
                           compute_dtype=jnp.float32):
    """Full forward matching the PyTorch ResidualBlock.
       x_ncw: (B, Cin, T) NCW layout.  Returns (z, s) in NCW.
       compute_dtype=jnp.bfloat16 halves HBM/VMEM traffic and doubles MXU rate
       on v6e/v7x (accumulation stays f32); keep f32 for tight tolerances."""
    w_di_t, b_di, w_skip_t, b_skip, w_out_t, b_out = params
    B, Cin, T = x_ncw.shape
    O, _, K = w_di_t.shape
    assert Cin == w_di_t.shape[1]
    assert Cin == O, "residual add requires input_size == output_size"

    halo = dilation * (K - 1)
    L = T + dilation - halo                       # Conv1d output length
    Cp = _round_up(Cin, 128)                      # lane-dense channel padding
    Op = _round_up(O, 128)
    hr = max(8, _round_up(max(halo, 1), 8))       # halo rows (sublane aligned)
    l_tile = max(hr, (l_tile // hr) * hr)         # tile = multiple of hr (and 8)
    n_t = -(-L // l_tile)                         # cdiv
    t_tot = n_t * l_tile + hr

    # f.pad(x, (dilation, 0)): left zero-pad; then right-pad up to the tiled
    # length; NCW -> (B, T, C); zero-pad channels to a multiple of 128 lanes.
    x_pad = jnp.pad(x_ncw, ((0, 0), (0, 0), (dilation, t_tot - (T + dilation))))
    x_btc = jnp.transpose(x_pad, (0, 2, 1))
    x_btc = jnp.pad(x_btc, ((0, 0), (0, 0), (0, Cp - Cin))).astype(compute_dtype)

    # Conv1d weight (O, Cin, K) -> stacked per-tap matrix (K*Cp, Op).
    w_di = jnp.transpose(w_di_t, (2, 1, 0))                    # (K, Cin, O)
    w_di = jnp.pad(w_di, ((0, 0), (0, Cp - Cin), (0, Op - O)))
    w_di = w_di.reshape(K * Cp, Op).astype(compute_dtype)
    b_di_p = jnp.pad(b_di, (0, Op - O))[None, :].astype(jnp.float32)

    # 1x1 conv weights (O, O, 1) -> one fused (Cp, 2*Op) matrix: [skip | out].
    def _one_by_one(w):
        w = jnp.transpose(w[:, :, 0], (1, 0))                  # (O_in, O_out)
        return jnp.pad(w, ((0, Cp - O), (0, Op - O)))
    w_so = jnp.concatenate([_one_by_one(w_skip_t), _one_by_one(w_out_t)],
                           axis=1).astype(compute_dtype)       # (Cp, 2*Op)
    b_so = jnp.concatenate([jnp.pad(b_skip, (0, Op - O)),
                            jnp.pad(b_out, (0, Op - O))])[None, :].astype(jnp.float32)

    s_out, z_out = residual_block_pallas(x_btc, w_di, b_di_p, w_so, b_so,
                                         dilation=dilation, l_tile=l_tile, hr=hr)

    s = s_out[:, :L, :O]
    z = z_out[:, :L, :O]
    # TODO(synk): when stacking many ResidualBlocks, keep activations in
    # (B, T, C) layout across the whole stack (and/or fuse several blocks into
    # one pallas_call) instead of transposing back to NCW per block.
    return jnp.transpose(z, (0, 2, 1)), jnp.transpose(s, (0, 2, 1))


def reference_forward(x_ncw, params, *, dilation):
    """Pure-JAX reference replicating the PyTorch module semantics."""
    w_di_t, b_di, w_skip_t, b_skip, w_out_t, b_out = params
    xp = jnp.pad(x_ncw, ((0, 0), (0, 0), (dilation, 0)))
    K = w_di_t.shape[2]
    L = xp.shape[2] - dilation * (K - 1)
    z = jnp.zeros((x_ncw.shape[0], w_di_t.shape[0], L), jnp.float32)
    for k in range(K):
        z = z + jnp.einsum('oc,bct->bot', w_di_t[:, :, k],
                           xp[:, :, k * dilation:k * dilation + L])
    z = z + b_di[None, :, None]
    g = jnp.tanh(z) * jax.nn.sigmoid(z)
    s = jnp.einsum('oc,bct->bot', w_skip_t[:, :, 0], g) + b_skip[None, :, None]
    zo = (jnp.einsum('oc,bct->bot', w_out_t[:, :, 0], g)
          + b_out[None, :, None] + xp[:, :, -L:])
    return zo, s


if __name__ == "__main__":
    # Small, deterministic configuration.  input_size == output_size is required
    # by the residual add in the original module.
    B, C, T = 2, 8, 16
    input_size = output_size = C
    kernel_size = 2
    dilation = 2

    key = jax.random.PRNGKey(0)
    kx, k1, k2, k3, k4, k5, k6 = jax.random.split(key, 7)

    x = jax.random.normal(kx, (B, input_size, T), dtype=jnp.float32)

    scale = 0.2
    w_di = scale * jax.random.normal(
        k1, (output_size, input_size, kernel_size), dtype=jnp.float32)
    b_di = scale * jax.random.normal(k2, (output_size,), dtype=jnp.float32)
    w_skip = scale * jax.random.normal(
        k3, (output_size, output_size, 1), dtype=jnp.float32)
    b_skip = scale * jax.random.normal(k4, (output_size,), dtype=jnp.float32)
    w_out = scale * jax.random.normal(
        k5, (output_size, output_size, 1), dtype=jnp.float32)
    b_out = scale * jax.random.normal(k6, (output_size,), dtype=jnp.float32)

    params = (w_di, b_di, w_skip, b_skip, w_out, b_out)

    # l_tile=8 -> two time tiles, exercising the halo logic and the 2-D
    # parallel grid on the small demo shapes.
    z, s = residual_block_forward(x, params, dilation=dilation, l_tile=8)
    z = jax.block_until_ready(z)
    s = jax.block_until_ready(s)

    z_ref, s_ref = reference_forward(x, params, dilation=dilation)
    np.testing.assert_allclose(np.asarray(z), np.asarray(z_ref),
                               rtol=1e-4, atol=1e-4)
    np.testing.assert_allclose(np.asarray(s), np.asarray(s_ref),
                               rtol=1e-4, atol=1e-4)

    print("KERNEL_OK")
</pallas_src>

<mosaic_0001>
module attributes {stable_mosaic.version = 11 : i64} {
  func.func @residual_block_kernel(%arg0: i32, %arg1: i32, %arg2: memref<1x8x128xf32, #tpu.memory_space<vmem>>, %arg3: memref<1x8x128xf32, #tpu.memory_space<vmem>>, %arg4: memref<256x128xf32, #tpu.memory_space<vmem>>, %arg5: memref<1x128xf32, #tpu.memory_space<vmem>>, %arg6: memref<128x256xf32, #tpu.memory_space<vmem>>, %arg7: memref<1x256xf32, #tpu.memory_space<vmem>>, %arg8: memref<1x8x128xf32, #tpu.memory_space<vmem>>, %arg9: memref<1x8x128xf32, #tpu.memory_space<vmem>>) attributes {dimension_semantics = [#tpu.dimension_semantics<parallel>, #tpu.dimension_semantics<parallel>], iteration_bounds = array<i64: 2, 2>, scalar_prefetch = 0 : i64, scratch_operands = 0 : i64, tpu.core_type = #tpu.core_type<tc>, window_params = [{transform_indices = @transform_0, window_bounds = array<i64: 1, 8, 128>}, {transform_indices = @transform_1, window_bounds = array<i64: 1, 8, 128>}, {pipeline_mode = #tpu.pipeline_mode<synchronous>, transform_indices = @transform_2, window_bounds = array<i64: 256, 128>}, {pipeline_mode = #tpu.pipeline_mode<synchronous>, transform_indices = @transform_3, window_bounds = array<i64: 1, 128>}, {pipeline_mode = #tpu.pipeline_mode<synchronous>, transform_indices = @transform_4, window_bounds = array<i64: 128, 256>}, {pipeline_mode = #tpu.pipeline_mode<synchronous>, transform_indices = @transform_5, window_bounds = array<i64: 1, 256>}, {transform_indices = @transform_6, window_bounds = array<i64: 1, 8, 128>}, {transform_indices = @transform_7, window_bounds = array<i64: 1, 8, 128>}]} {
    %c0 = arith.constant 0 : index
    %c0_0 = arith.constant 0 : index
    %c0_1 = arith.constant 0 : index
    %0 = vector.load %arg2[%c0, %c0_0, %c0_1] : memref<1x8x128xf32, #tpu.memory_space<vmem>>, vector<1x8x128xf32>
    %1 = vector.shape_cast %0 : vector<1x8x128xf32> to vector<8x128xf32>
    %c0_2 = arith.constant 0 : index
    %c0_3 = arith.constant 0 : index
    %c0_4 = arith.constant 0 : index
    %2 = vector.load %arg3[%c0_2, %c0_3, %c0_4] : memref<1x8x128xf32, #tpu.memory_space<vmem>>, vector<1x8x128xf32>
    %3 = vector.shape_cast %2 : vector<1x8x128xf32> to vector<8x128xf32>
    %4 = vector.extract_strided_slice %1 {offsets = [2, 0], sizes = [6, 128], strides = [1, 1]} : vector<8x128xf32> to vector<6x128xf32>
    %5 = vector.extract_strided_slice %3 {offsets = [0, 0], sizes = [2, 128], strides = [1, 1]} : vector<8x128xf32> to vector<2x128xf32>
    %6 = tpu.concatenate %4, %5 in 0 : vector<6x128xf32>, vector<2x128xf32> -> vector<8x128xf32>
    %c0_5 = arith.constant 0 : index
    %c0_6 = arith.constant 0 : index
    %7 = vector.load %arg4[%c0_5, %c0_6] : memref<256x128xf32, #tpu.memory_space<vmem>>, vector<128x128xf32>
    %cst = arith.constant dense<0.000000e+00> : vector<8x128xf32>
    %8 = tpu.matmul %1, %7, %cst {dimension_numbers = #tpu.dot_dimension_numbers<[1], [0], [0], [1], [0, 0, 1, 1], [], []>} : vector<8x128xf32>, vector<128x128xf32>, vector<8x128xf32> -> vector<8x128xf32>
    %c128 = arith.constant 128 : index
    %c0_7 = arith.constant 0 : index
    %9 = vector.load %arg4[%c128, %c0_7] : memref<256x128xf32, #tpu.memory_space<vmem>>, vector<128x128xf32>
    %cst_8 = arith.constant dense<0.000000e+00> : vector<8x128xf32>
    %10 = tpu.matmul %6, %9, %cst_8 {dimension_numbers = #tpu.dot_dimension_numbers<[1], [0], [0], [1], [0, 0, 1, 1], [], []>} : vector<8x128xf32>, vector<128x128xf32>, vector<8x128xf32> -> vector<8x128xf32>
    %11 = arith.addf %8, %10 : vector<8x128xf32>
    %c0_9 = arith.constant 0 : index
    %c0_10 = arith.constant 0 : index
    %12 = vector.load %arg5[%c0_9, %c0_10] : memref<1x128xf32, #tpu.memory_space<vmem>>, vector<1x128xf32>
    %13 = vector.broadcast %12 : vector<1x128xf32> to vector<8x128xf32>
    %14 = arith.addf %11, %13 : vector<8x128xf32>
    %cst_11 = arith.constant -2.000000e+01 : f32
    %cst_12 = arith.constant 2.000000e+01 : f32
    %15 = vector.broadcast %cst_11 : f32 to vector<8x128xf32>
    %16 = arith.maximumf %15, %14 : vector<8x128xf32>
    %17 = vector.broadcast %cst_12 : f32 to vector<8x128xf32>
    %18 = arith.minimumf %17, %16 : vector<8x128xf32>
    %cst_13 = arith.constant 0.000000e+00 : f32
    %19 = vector.broadcast %cst_13 : f32 to vector<8x128xf32>
    %20 = arith.subf %19, %18 : vector<8x128xf32>
    %21 = math.exp %20 : vector<8x128xf32>
    %22 = arith.mulf %21, %21 : vector<8x128xf32>
    %cst_14 = arith.constant 1.000000e+00 : f32
    %23 = vector.broadcast %cst_14 : f32 to vector<8x128xf32>
    %24 = arith.subf %23, %22 : vector<8x128xf32>
    %cst_15 = arith.constant 1.000000e+00 : f32
    %25 = vector.broadcast %cst_15 : f32 to vector<8x128xf32>
    %26 = arith.addf %25, %22 : vector<8x128xf32>
    %cst_16 = arith.constant 1.000000e+00 : f32
    %27 = vector.broadcast %cst_16 : f32 to vector<8x128xf32>
    %28 = arith.addf %27, %21 : vector<8x128xf32>
    %29 = arith.mulf %26, %28 : vector<8x128xf32>
    %30 = arith.divf %24, %29 : vector<8x128xf32>
    %c0_17 = arith.constant 0 : index
    %c0_18 = arith.constant 0 : index
    %31 = vector.load %arg6[%c0_17, %c0_18] : memref<128x256xf32, #tpu.memory_space<vmem>>, vector<128x256xf32>
    %cst_19 = arith.constant dense<0.000000e+00> : vector<8x256xf32>
    %32 = tpu.matmul %30, %31, %cst_19 {dimension_numbers = #tpu.dot_dimension_numbers<[1], [0], [0], [1], [0, 0, 1, 1], [], []>} : vector<8x128xf32>, vector<128x256xf32>, vector<8x256xf32> -> vector<8x256xf32>
    %c0_20 = arith.constant 0 : index
    %c0_21 = arith.constant 0 : index
    %33 = vector.load %arg7[%c0_20, %c0_21] : memref<1x256xf32, #tpu.memory_space<vmem>>, vector<1x256xf32>
    %34 = vector.broadcast %33 : vector<1x256xf32> to vector<8x256xf32>
    %35 = arith.addf %32, %34 : vector<8x256xf32>
    %36 = vector.extract_strided_slice %35 {offsets = [0, 0], sizes = [8, 128], strides = [1, 1]} : vector<8x256xf32> to vector<8x128xf32>
    %c0_22 = arith.constant 0 : index
    %c0_23 = arith.constant 0 : index
    %c0_24 = arith.constant 0 : index
    %37 = vector.load %arg8[%c0_22, %c0_23, %c0_24] : memref<1x8x128xf32, #tpu.memory_space<vmem>>, vector<1x8x128xf32>
    %38 = vector.shape_cast %37 : vector<1x8x128xf32> to vector<8x128xf32>
    %39 = vector.shape_cast %36 : vector<8x128xf32> to vector<1x8x128xf32>
    tpu.vector_store %arg8[%c0_22, %c0_23, %c0_24], %39 {strides = array<i32>} : memref<1x8x128xf32, #tpu.memory_space<vmem>>, vector<1x8x128xf32>,
    %40 = vector.extract_strided_slice %35 {offsets = [0, 128], sizes = [8, 128], strides = [1, 1]} : vector<8x256xf32> to vector<8x128xf32>
    %41 = arith.addf %40, %6 : vector<8x128xf32>
    %c0_25 = arith.constant 0 : index
    %c0_26 = arith.constant 0 : index
    %c0_27 = arith.constant 0 : index
    %42 = vector.load %arg9[%c0_25, %c0_26, %c0_27] : memref<1x8x128xf32, #tpu.memory_space<vmem>>, vector<1x8x128xf32>
    %43 = vector.shape_cast %42 : vector<1x8x128xf32> to vector<8x128xf32>
    %44 = vector.shape_cast %41 : vector<8x128xf32> to vector<1x8x128xf32>
    tpu.vector_store %arg9[%c0_25, %c0_26, %c0_27], %44 {strides = array<i32>} : memref<1x8x128xf32, #tpu.memory_space<vmem>>, vector<1x8x128xf32>,
    return
  }
  func.func @transform_0(%arg0: i32, %arg1: i32) -> (i32, i32, i32) {
    %c0_i32 = arith.constant 0 : i32
    %c0_i32_0 = arith.constant 0 : i32
    return %arg0, %arg1, %c0_i32 : i32, i32, i32
  }
  func.func @transform_1(%arg0: i32, %arg1: i32) -> (i32, i32, i32) {
    %c1_i32 = arith.constant 1 : i32
    %0 = arith.addi %arg1, %c1_i32 : i32
    %c1_i32_0 = arith.constant 1 : i32
    %1 = arith.muli %0, %c1_i32_0 : i32
    %c0_i32 = arith.constant 0 : i32
    %c0_i32_1 = arith.constant 0 : i32
    return %arg0, %1, %c0_i32 : i32, i32, i32
  }
  func.func @transform_2(%arg0: i32, %arg1: i32) -> (i32, i32) {
    %c0_i32 = arith.constant 0 : i32
    %c0_i32_0 = arith.constant 0 : i32
    %c0_i32_1 = arith.constant 0 : i32
    return %c0_i32, %c0_i32_0 : i32, i32
  }
  func.func @transform_3(%arg0: i32, %arg1: i32) -> (i32, i32) {
    %c0_i32 = arith.constant 0 : i32
    %c0_i32_0 = arith.constant 0 : i32
    %c0_i32_1 = arith.constant 0 : i32
    return %c0_i32, %c0_i32_0 : i32, i32
  }
  func.func @transform_4(%arg0: i32, %arg1: i32) -> (i32, i32) {
    %c0_i32 = arith.constant 0 : i32
    %c0_i32_0 = arith.constant 0 : i32
    %c0_i32_1 = arith.constant 0 : i32
    return %c0_i32, %c0_i32_0 : i32, i32
  }
  func.func @transform_5(%arg0: i32, %arg1: i32) -> (i32, i32) {
    %c0_i32 = arith.constant 0 : i32
    %c0_i32_0 = arith.constant 0 : i32
    %c0_i32_1 = arith.constant 0 : i32
    return %c0_i32, %c0_i32_0 : i32, i32
  }
  func.func @transform_6(%arg0: i32, %arg1: i32) -> (i32, i32, i32) {
    %c0_i32 = arith.constant 0 : i32
    %c0_i32_0 = arith.constant 0 : i32
    return %arg0, %arg1, %c0_i32 : i32, i32, i32
  }
  func.func @transform_7(%arg0: i32, %arg1: i32) -> (i32, i32, i32) {
    %c0_i32 = arith.constant 0 : i32
    %c0_i32_0 = arith.constant 0 : i32
    return %arg0, %arg1, %c0_i32 : i32, i32, i32
  }
}

</mosaic_0001>

<bundles_post_ra>
// kernel: tpu_custom_call.1
= control target key start
LH: loop header
LB: loop body
LE: loop exit
PB: predicated region body
PF: predicated region fallthrough
CT: control target
= control target key end

     0   :  { %s1903_s0 = inlined_call_operand.hbm [shape: f32[2,24,128], index: 0, kind: input, shape index: {}]   ;;  %s1904_s1 = inlined_call_operand.hbm [shape: f32[2,24,128], index: 1, kind: input, shape index: {}]   ;;  %s1905_s2 = inlined_call_operand.hbm [shape: f32[256,128], index: 2, kind: input, shape index: {}]   ;;  %s1906_s3 = inlined_call_operand.vmem [shape: f32[1,128], index: 3, kind: input, shape index: {}]   ;;  %s1907_s4 = inlined_call_operand.hbm [shape: f32[128,256], index: 4, kind: input, shape index: {}]   ;;  %s1908_s5 = inlined_call_operand.vmem [shape: f32[1,256], index: 5, kind: input, shape index: {}]   ;;  %s1909_s6 = inlined_call_operand.hbm [shape: f32[2,16,128], index: 6, kind: output, shape index: {0}]   ;;  %s1910_s7 = inlined_call_operand.hbm [shape: f32[2,16,128], index: 7, kind: output, shape index: {1}]  }
   0x1   :  { %1922 = sst [smem:[#allocation26_spill]] %s1905_s2 }
   0x2   :  { %1923 = sst [smem:[#allocation27_spill]] %s1907_s4 }
   0x3   :  { %1924 = sst [smem:[#allocation28_spill]] %s1908_s5 }
   0x4   :  { %1925 = sst [smem:[#allocation29_spill]] %s1909_s6 }
   0x5   :  { %1926 = sst [smem:[#allocation30_spill]] %s1910_s7 }
   0x6   :  { %13 = vsyncpa [#allocation3], 0 }
   0x7   :  { %15 = vsyncpa [#allocation3 + $0x1], 0 }
   0x8   :  { %16 = vsyncpa [#allocation6], 0 }
   0x9   :  { %18 = vsyncpa [#allocation6 + $0x1], 0 }
   0xa   :  { %19 = vsyncpa [#allocation9], 0 }
   0xb   :  { %20 = vsyncpa [#allocation4], 0 }
   0xc   :  { %22 = vsyncpa [#allocation4 + $0x1], 0 }
   0xd   :  { %23 = vsyncpa [#allocation12], 0 }
   0xe   :  { %25 = vsyncpa [#allocation12 + $0x1], 0  ;;  %s1519_s24 = smov 0   ;;  %s1521_s25 = smov 0  }
   0xf   :  { %s1523_s26 = smov 0   ;;  %s1525_s27 = smov 0  }
  0x10   :  { %s1527_s28 = smov 0   ;;  %s1529_s29 = smov 0  }
  0x11   :  { %s1531_s30 = smov 0   ;;  %s1533_s8 = smov 0  }
  0x12   :  { %s1535_s9 = smov 0   ;;  %s1537_s10 = smov 0  }
  0x13   :  { %s1539_s11 = smov 0  }
  0x14 LB: > { %1927 = sst [smem:[#allocation19_spill]] %s1449_s30  ;;  %s1575_s12 = sadd.s32 4294967295, %s1465_s11   ;;  %s1465_s11 = sphi %s1539_s11, %s31_s11   ;;  %s1461_s10 = sphi %s1537_s10, %s1964_s10   ;;  %s1457_s9 = sphi %s1535_s9, %s1972_s9   ;;  %s1453_s8 = sphi %s1533_s8, %s1962_s8   ;;  %s1449_s30 = sphi %s1531_s30, %s1971_s30   ;;  %s1445_s29 = sphi %s1529_s29, %s1970_s29   ;;  %s1441_s28 = sphi %s1527_s28, %s1969_s28   ;;  %s1437_s27 = sphi %s1525_s27, %s1968_s27   ;;  %s1433_s26 = sphi %s1523_s26, %s1967_s26   ;;  %s1429_s25 = sphi %s1521_s25, %s1966_s25   ;;  %s1425_s24 = sphi %s1519_s24, %s1965_s24  }
  0x15   : > { %1928 = sst [smem:[#allocation20_spill]] %s1453_s8  ;;  %p921_p0 = scmp.ge.s32.totalorder %s1465_s11, 1 }
  0x16   : > { %1929 = sst [smem:[#allocation21_spill]] %s1461_s10  ;;  %p1919_p1 = scmp.eq.s32.totalorder %s1575_s12, 0 }
  0x17   : > { %p246_p2 = scmp.lt.s32.totalorder %s1465_s11, 5  ;;  %s1467_s14 = smov [#allocation7]  }
  0x18   : > { %s258_s15 = sshll.u32 %s1467_s14, 4  ;;  %s1468_s17 = smov [#allocation8]   ;;  %s259_s15 = int_to_ptr.vmem [resolvable:$true] %s258_s15 }
  0x19   : > { %p1580_p3 = pnand %p921_p0, %p246_p2  ;;  %s274_s18 = sshll.u32 %s1468_s17, 4  ;;  %s275_s18 = int_to_ptr.vmem [resolvable:$true] %s274_s18 }
  0x1a   : > { %s1205_s19 = scalar_lea.vmem %s259_s15, 4096  ;;  %p1213_p10 = scmp.lt.s32.totalorder %s259_s15, %s259_s15 }
  0x1b   : > { %p1067_p4 = pneg %p1580_p3  ;;  %p1206_p7 = scmp.ne.s32.totalorder %s259_s15, %s1205_s19 }
  0x1c   : > { %p1214_p11 = scmp.lt.s32.totalorder %s1205_s19, %s1205_s19 }
  0x1d   : > { %p1588_p5 = pnand %p1067_p4, %p1919_p1 }
  0x1e   : > { %p1215_p12 = por %p1214_p11, %p1213_p10 }
  0x1f   : > { %p1196_p6 = pneg %p1588_p5 }
  0x21   : > { %p1208_p8 = pnand %p1206_p7, %p1196_p6 }
  0x23   : > { %p1209_p9 = pneg %p1208_p8 }
  0x25   : > { %p1216_p13 = pnand %p1215_p12, %p1209_p9 }
  0x27   : > { %1219 = shalt.err (!%p1216_p13)
}
  0x28   : > { %s1469_s20 = smov 128   ;;  %s1470_s21 = smov 8  }
  0x29   : > { %s1932_s2 = sld [smem:[#allocation26_spill]]  ;;  %s1231_s14 = scalar_lea.vmem %s275_s18, 4096 }
  0x2a   : > { %p1232_p0 = scmp.ne.s32.totalorder %s275_s18, %s1231_s14  ;;  %p1239_p7 = scmp.lt.s32.totalorder %s275_s18, %s275_s18 }
  0x2b   : > { %p1240_p8 = scmp.lt.s32.totalorder %s1231_s14, %s1231_s14 }
  0x2c   : > { %p1234_p2 = pnand %p1232_p0, %p1196_p6 }
  0x2d   : > { %p1241_p10 = por %p1240_p8, %p1239_p7 }
  0x2e   : > { %p1235_p4 = pneg %p1234_p2 }
  0x2f   : > { %1070 = dma.hbm_to_vmem [thread:$0]  (!%p1588_p5), %s1932_s2, 4096, %s259_s15, [#allocation6], %s1469_s20, %s1469_s20, %s1470_s21  }
  0x30   : > { %p1242_p9 = pnand %p1241_p10, %p1235_p4 }
  0x32   : > { %1245 = shalt.err (!%p1242_p9)
}
  0x33   : > { %s1471_s17 = smov 256   ;;  %s1472_s15 = smov 16  }
  0x34   : > { %s1933_s4 = sld [smem:[#allocation27_spill]]  ;;  %s920_s21 = sadd.s32 4294967294, %s1465_s11  }
  0x35   : > { %s40_s22 = sadd.s32 1, %s1457_s9  ;;  %s43_s23 = sadd.s32 1, %s1461_s10 }
  0x36   : > { %p41_p6 = scmp.ge.s32.totalorder %s40_s22, 2  ;;  %s52_s14 = sadd.s32 1, %s1445_s29 }
  0x37   : > { %p59_p11 = scmp.ne.s32.totalorder %s1445_s29, %s1441_s28  ;;  %p65_p13 = scmp.ne.s32.totalorder %s1441_s28, %s1437_s27 }
  0x38   : > { %s1616_s2 = scalar_select %p41_p6, 0, %s40_s22  }
  0x39   : > { %s1974_s23 = smov (!%p41_p6, %s43_s23), %s1461_s10  ;;  %p1641_p2 = por %p1919_p1, %p65_p13 }
  0x3a   : > { %1073 = dma.hbm_to_vmem [thread:$0]  (!%p1588_p5), %s1933_s4, 4096, %s275_s18, [#allocation9], %s1471_s17, %s1471_s17, %s1472_s15  }
  0x3b   : > { %1934 = sst [smem:[#allocation22_spill]] %s1616_s2  ;;  %s48_s16 = ssub.s32 %s1457_s9, %s1616_s2 }
  0x3c   : > { %p1920_p5 = scmp.eq.s32.totalorder %s1465_s11, 0  ;;  %p45_p12 = scmp.ge.s32.totalorder %s1974_s23, 2 }
  0x3d   : > { %s76_s17 = sadd.s32 1, %s1616_s2  ;;  %p205_p4 = scmp.eq.s32.totalorder %s1575_s12, 3 }
  0x3e   : > { %p1629_p0 = por %p1920_p5, %p59_p11  ;;  %s1976_s23 = smov (%p45_p12, %s1974_s23), 0 }
  0x3f   : > { %1936 = sst [smem:[#allocation23_spill]] %s1976_s23  ;;  %s78_s19 = ssub.s32 %s40_s22, %s76_s17 }
  0x40   : > { %s47_s20 = ssub.s32 %s1461_s10, %s1976_s23  ;;  %p1655_p10 = por %p205_p4, %p59_p11 }
  0x41   : > { %s49_s4 = sor.u32 %s48_s16, %s47_s20  ;;  %s79_s7 = sor.u32 %s78_s19, %s47_s20 }
  0x42   : > { %p50_p7 = scmp.eq.s32.totalorder %s49_s4, 0  ;;  %p1648_p8 = scmp.eq.s32.totalorder %s79_s7, 0 }
  0x43   : > { %s1939_s6 = scalar_select %p1655_p10, 1, 0 }
  0x44   : > { %p211_p9 = scmp.eq.s32.totalorder %s920_s21, 3  ;;  %p1918_p12 = scmp.lt.s32.totalorder %s1465_s11, 4 }
  0x45   : > { %1940 = sst [smem:[#allocation24_spill]] %s1939_s6  ;;  %s291_s4 = sand.u32 1, %s1445_s29  }
  0x46   : > { %s1660_s5 = scalar_select %p50_p7, %s1445_s29, %s52_s14  }
  0x47   : > { %p1665_p6 = por %p211_p9, %p65_p13  ;;  %s1050_s16 = smul.u32 3, %s1461_s10 }
  0x48   : > { %1941 = sst [smem:[#allocation25_spill]] %s1660_s5  ;;  %s925_s7 = sshll.u32 %s291_s4, 3 }
  0x49   : > { %s1942_s22 = scalar_select %p1665_p6, 1, 0 }
  0x4a   : > { %s300_s17 = sadd.s32 %s1457_s9, %s1050_s16  ;;  %s295_s20 = scalar_lea.vmem [#allocation2], %s925_s7 }
  0x4b   : > { %s926_s19 = sshll.u32 %s300_s17, 7  ;;  %s304_s23 = sshll.u32 %s295_s20, 4  ;;  %s305_s23 = int_to_ptr.vmem [resolvable:$true] %s304_s23 }
  0x4c   : > { %s302_s6 = scalar_lea.hbm %s1903_s0, %s926_s19  ;;  %p1680_p11 = pnand %p1918_p12, %p1629_p0 }
  0x4d   : > { %s1687_s10 = scalar_lea.hbm %s1904_s1, %s926_s19  ;;  %s292_s16 = scalar_lea.sflag [#allocation3], %s291_s4 }
  0x4e   : > { %p1248_p13 = pneg %p1680_p11  ;;  %s1259_s7 = scalar_lea.vmem %s305_s23, 128 }
  0x4f   : > { %p1260_p4 = scmp.ne.s32.totalorder %s305_s23, %s1259_s7  ;;  %s1473_s30 = smov [#allocation2]  }
  0x50   : > { %s1264_s8 = sshll.u32 %s1473_s30, 4  ;;  %s1265_s8 = int_to_ptr.vmem [resolvable:$false] %s1264_s8 }
  0x51   : > { %p1262_p7 = pnand %p1260_p4, %p1248_p13  ;;  %s1266_s18 = scalar_lea.vmem %s1265_s8, 256 }
  0x52   : > { %p1267_p0 = scmp.lt.s32.totalorder %s305_s23, %s1265_s8  ;;  %p1268_p12 = scmp.lt.s32.totalorder %s1266_s18, %s1259_s7 }
  0x53   : > { %p1263_p9 = pneg %p1262_p7 }
  0x54   : > { %p1269_p1 = por %p1268_p12, %p1267_p0 }
  0x56   : > { %p1270_p5 = pnand %p1269_p1, %p1263_p9 }
  0x58   : > { %1273 = shalt.err (!%p1270_p5)
}
  0x59   : > { %1077 = dma.hbm_to_vmem [thread:$0]  (!%p1680_p11), %s302_s6, 128, %s305_s23, %s292_s16  }
  0x5a   : > { %s82_s5 = sadd.s32 1, %s1433_s26  ;;  %p89_p1 = scmp.ne.s32.totalorder %s1433_s26, %s1429_s25 }
  0x5b   : > { %s1697_s4 = scalar_select %p1648_p8, %s1433_s26, %s82_s5  }
  0x5c   : > { %p95_p5 = scmp.ne.s32.totalorder %s1429_s25, %s1425_s24  ;;  %s311_s17 = sand.u32 1, %s1465_s11  }
  0x5d   : > { %s313_s19 = sand.u32 1, %s1433_s26   ;;  %p1944_p12 = scmp.eq.s32.totalorder %s1465_s11, 0 }
  0x5e   : > { %p1945_p4 = scmp.eq.s32.totalorder %s1575_s12, 0  ;;  %s927_s21 = sshll.u32 %s313_s19, 3 }
  0x5f   : > { %p91_p13 = por %p89_p1, %p1944_p12  ;;  %s809_s14 = scalar_lea.hbm %s1687_s10, 128 }
  0x60   : > { %p1709_p7 = por %p95_p5, %p1945_p4  ;;  %s315_s7 = scalar_lea.vmem [#allocation5], %s927_s21 }
  0x61   : > { %s325_s30 = sshll.u32 %s315_s7, 4  ;;  %p1947_p11 = scmp.lt.s32.totalorder %s1465_s11, 4  ;;  %s326_s30 = int_to_ptr.vmem [resolvable:$true] %s325_s30 }
  0x62   : > { %s312_s6 = scalar_lea.sflag [#allocation6], %s311_s17  ;;  %s1287_s24 = scalar_lea.vmem %s326_s30, 128 }
  0x63   : > { %p1716_p9 = pnand %p1947_p11, %p91_p13  ;;  %p1288_p0 = scmp.ne.s32.totalorder %s326_s30, %s1287_s24 }
  0x64   : > { %s1474_s23 = smov [#allocation5]  }
  0x65   : > { %p1276_p8 = pneg %p1716_p9  ;;  %s1292_s16 = sshll.u32 %s1474_s23, 4  ;;  %s1293_s16 = int_to_ptr.vmem [resolvable:$false] %s1292_s16 }
  0x66   : > { %s1294_s10 = scalar_lea.vmem %s1293_s16, 256  ;;  %p1295_p12 = scmp.lt.s32.totalorder %s326_s30, %s1293_s16 }
  0x67   : > { %p1290_p1 = pnand %p1288_p0, %p1276_p8  ;;  %p1296_p4 = scmp.lt.s32.totalorder %s1294_s10, %s1287_s24 }
  0x69   : > { %p1291_p5 = pneg %p1290_p1  ;;  %p1297_p6 = por %p1296_p4, %p1295_p12 }
  0x6b   : > { %p1298_p13 = pnand %p1297_p6, %p1291_p5 }
  0x6d   : > { %1301 = shalt.err (!%p1298_p13)
}
  0x6e   : > { %1080 = dma.hbm_to_vmem [thread:$0]  (!%p1716_p9), %s809_s14, 128, %s326_s30, %s312_s6  }
  0x6f   : > { %334 = sbr.rel (%p1580_p3) target bundleno = 632 (0x278), region = 44  ;;  %s1727_s8 = sand.u32 (!%p1580_p3), 1, %s1441_s28  }
  0x70   : > { %s1730_s18 = sshll.u32 (!%p1580_p3), %s1727_s8, 3  ;;  %s337_s5 = scalar_lea.sflag (!%p1580_p3), [#allocation3], %s1727_s8 }
  0x71   : > { %s340_s17 = scalar_lea.vmem (!%p1580_p3), [#allocation2], %s1730_s18 }
  0x74   : > { %1400 = dma.done.wait (%p1641_p2), %s337_s5, 128  }
  0x75   : > { %1402 = vsyncadd (%p1641_p2), %s337_s5, 4294967168  ;;  %s345_s13 = sand.u32 1, %s1575_s12   ;;  %s347_s19 = sand.u32 1, %s1429_s25  }
  0x76   : > { %s1740_s21 = sshll.u32 %s347_s19, 3  ;;  %s346_s14 = scalar_lea.sflag [#allocation6], %s345_s13 }
  0x77   : > { %s349_s7 = scalar_lea.vmem [#allocation5], %s1740_s21 }
  0x78   : > { %1404 = dma.done.wait (%p1709_p7), %s346_s14, 128  }
  0x79   : > { %1406 = vsyncadd (%p1709_p7), %s346_s14, 4294967168  ;;  %p1949_p3 = scmp.eq.s32.totalorder %s1575_s12, 0 }
  0x7b   : > { %1408 = dma.done.wait (%p1949_p3), [#allocation6], 4096   ;;  %p1950_p2 = pmov %p1949_p3 }
  0x7d   : > { %1410 = vsyncadd (%p1950_p2), [#allocation6], 4294963200  ;;  %p1951_p6 = pmov %p1950_p2 }
  0x7e   : > { %p1952_p11 = pmov %p1950_p2 }
  0x7f   : > { %1412 = dma.done.wait (%p1951_p6), [#allocation9], 4096  }
  0x80   : > { %1414 = vsyncadd (%p1952_p11), [#allocation9], 4294963200  ;;  %v1475_v0 = vmov 0.0   ;;  %vm1476_vm0 = vmmov 0   ;;  %v440_v1 = vld [vmem:[#allocation7 + $0xf8] sm:$0xff]  ;;  %v439_v3 = vld [vmem:[#allocation7 + $0xf0] sm:$0xff] }
  0x81   : > { %980 = vmatprep.subr.mxu0 %v1475_v0  ;;  %1015 = vmatprep.subr.mxu1 %v1475_v0  ;;  %v424_v2 = vld [vmem:[#allocation7 + $0x78] sm:$0xff]  ;;  %v423_v4 = vld [vmem:[#allocation7 + $0x70] sm:$0xff]  ;;  %v438_v5 = vld [vmem:[#allocation7 + $0xe8] sm:$0xff]  ;;  %vm407_vm1 = vcmask 1045504   ;;  %s1953_s20 = sld [smem:[#allocation20_spill]]  ;;  %s1921_s12 = scalar_lea.vmem [#allocation11], %s1730_s18 }
  0x82   : > { %1012 = vmatprep.mubr.msk.f32.mxu0 %vm1476_vm0, %v1475_v0  ;;  %1047 = vmatprep.mubr.msk.f32.mxu1 %vm1476_vm0, %v1475_v0  ;;  %v422_v6 = vld [vmem:[#allocation7 + $0x68] sm:$0xff]  ;;  %v437_v7 = vld [vmem:[#allocation7 + $0xe0] sm:$0xff]  ;;  %v436_v9 = vld [vmem:[#allocation7 + $0xd8] sm:$0xff]  ;;  %s1954_s30 = sld [smem:[#allocation19_spill]]  ;;  %s1821_s15 = sshll.u32 %s1921_s12, 4  ;;  %s756_s15 = int_to_ptr.vmem [resolvable:$true] %s1821_s15 }
  0x83   : > { %981 = vmatpush3.msra.mxu0 %v440_v1  ;;  %1016 = vmatpush3.msra.mxu1 %v424_v2  ;;  %v421_v8 = vld [vmem:[#allocation7 + $0x60] sm:$0xff]  ;;  %v420_v10 = vld [vmem:[#allocation7 + $0x58] sm:$0xff]  ;;  %v435_v11 = vld [vmem:[#allocation7 + $0xd0] sm:$0xff]  ;;  %s1955_s23 = sld [smem:[#allocation28_spill]] }
  0x84   : > { %982 = vmatprep.subr.mxu0 %v1475_v0  ;;  %1017 = vmatprep.subr.mxu1 %v1475_v0  ;;  %v419_v12 = vld [vmem:[#allocation7 + $0x50] sm:$0xff]  ;;  %v434_v13 = vld [vmem:[#allocation7 + $0xc8] sm:$0xff]  ;;  %v433_v15 = vld [vmem:[#allocation7 + $0xc0] sm:$0xff]  ;;  %s1957_s14 = sld [smem:[#allocation29_spill]] }
  0x85   : > { %983 = vmatpush3.msra.mxu0 %v439_v3  ;;  %1018 = vmatpush3.msra.mxu1 %v423_v4  ;;  %v418_v14 = vld [vmem:[#allocation7 + $0x48] sm:$0xff]  ;;  %v417_v16 = vld [vmem:[#allocation7 + $0x40] sm:$0xff]  ;;  %v432_v17 = vld [vmem:[#allocation7 + $0xb8] sm:$0xff] }
  0x86   : > { %984 = vmatprep.subr.mxu0 %v1475_v0  ;;  %1019 = vmatprep.subr.mxu1 %v1475_v0  ;;  %v416_v18 = vld [vmem:[#allocation7 + $0x38] sm:$0xff]  ;;  %v431_v19 = vld [vmem:[#allocation7 + $0xb0] sm:$0xff]  ;;  %v430_v21 = vld [vmem:[#allocation7 + $0xa8] sm:$0xff] }
  0x87   : > { %985 = vmatpush3.msra.mxu0 %v438_v5  ;;  %1020 = vmatpush3.msra.mxu1 %v422_v6  ;;  %v415_v20 = vld [vmem:[#allocation7 + $0x30] sm:$0xff]  ;;  %v414_v22 = vld [vmem:[#allocation7 + $0x28] sm:$0xff]  ;;  %v429_v23 = vld [vmem:[#allocation7 + $0xa0] sm:$0xff]  ;;  %s940_s2 = sshll.u32 %s1953_s20, 1  ;;  %s720_s20 = scalar_lea.sflag [#allocation4], %s1727_s8 }
  0x88   : > { %986 = vmatprep.subr.mxu0 %v1475_v0  ;;  %1021 = vmatprep.subr.mxu1 %v1475_v0  ;;  %v413_v24 = vld [vmem:[#allocation7 + $0x20] sm:$0xff]  ;;  %v428_v25 = vld [vmem:[#allocation7 + $0x98] sm:$0xff]  ;;  %v427_v29 = vld [vmem:[#allocation7 + $0x90] sm:$0xff]  ;;  %s1805_s16 = sadd.s32 %s1954_s30, %s940_s2  ;;  %s1477_s2 = smov [#allocation10]  }
  0x89   : > { %987 = vmatpush3.msra.mxu0 %v437_v7  ;;  %1022 = vmatpush3.msra.mxu1 %v421_v8  ;;  %v412_v26 = vld [vmem:[#allocation7 + $0x18] sm:$0xff]  ;;  %v399_v27 = vld [vmem:[%s340_s17] sm:$0xff]  ;;  %v411_v30 = vld [vmem:[#allocation7 + $0x10] sm:$0xff]  ;;  %s941_s10 = sshll.u32 %s1805_s16, 7  ;;  %s390_s17 = scalar_lea.vmem [#allocation10], %s1730_s18 }
  0x8a   : > { %988 = vmatprep.subr.mxu0 %v1475_v0  ;;  %1023 = vmatprep.subr.mxu1 %v1475_v0  ;;  %v400_v28 = vld [vmem:[%s349_s7] sm:$0xff]  ;;  %v402_v31 = vrot.slane %v399_v27, 2  ;;  %v426_v33 = vld [vmem:[#allocation7 + $0x88] sm:$0xff]  ;;  %v425_v35 = vld [vmem:[#allocation7 + $0x80] sm:$0xff]  ;;  %s740_s13 = sshll.u32 %s390_s17, 4  ;;  %s1814_s7 = scalar_lea.hbm %s1957_s14, %s941_s10  ;;  %s1816_s13 = int_to_ptr.vmem [resolvable:$true] %s740_s13 }
  0x8b   : > { %989 = vmatpush3.msra.mxu0 %v436_v9  ;;  %1024 = vmatpush3.msra.mxu1 %v420_v10  ;;  %v405_v32 = vrot.slane %v400_v28, 2  ;;  %v410_v34 = vld [vmem:[#allocation7 + $0x8] sm:$0xff]  ;;  %v409_v36 = vld [vmem:[#allocation7] sm:$0xff]  ;;  %v632_v38 = vld [vmem:[#allocation8 + $0xf8] sm:$0xff]  ;;  %s1303_s30 = scalar_lea.vmem %s1816_s13, 128  ;;  %s1307_s6 = sshll.u32 %s1477_s2, 4  ;;  %s1308_s6 = int_to_ptr.vmem [resolvable:$false] %s1307_s6 }
  0x8c   : > { %990 = vmatprep.subr.mxu0 %v1475_v0  ;;  %1025 = vmatprep.subr.mxu1 %v1475_v0  ;;  %v631_v39 = vld [vmem:[#allocation8 + $0xf0] sm:$0xff]  ;;  %v630_v40 = vld [vmem:[#allocation8 + $0xe8] sm:$0xff]  ;;  %v629_v41 = vld [vmem:[#allocation8 + $0xe0] sm:$0xff]  ;;  %p1304_p7 = scmp.ne.s32.totalorder %s1816_s13, %s1303_s30  ;;  %s1309_s24 = scalar_lea.vmem %s1308_s6, 256 }
  0x8d   : > { %991 = vmatpush3.msra.mxu0 %v435_v11  ;;  %1026 = vmatpush3.msra.mxu1 %v419_v12  ;;  %v1791_v37 = vsel %vm407_vm1, %v402_v31, %v405_v32  ;;  %v628_v42 = vld [vmem:[#allocation8 + $0xd8] sm:$0xff]  ;;  %v627_v43 = vld [vmem:[#allocation8 + $0xd0] sm:$0xff]  ;;  %v626_v44 = vld [vmem:[#allocation8 + $0xc8] sm:$0xff]  ;;  %p1310_p0 = scmp.lt.s32.totalorder %s1816_s13, %s1308_s6  ;;  %p1311_p1 = scmp.lt.s32.totalorder %s1309_s24, %s1303_s30 }
  0x8e   : > { %992 = vmatprep.subr.mxu0 %v1475_v0  ;;  %1027 = vmatprep.subr.mxu1 %v1475_v0  ;;  %v625_v45 = vld [vmem:[#allocation8 + $0xc0] sm:$0xff]  ;;  %v624_v46 = vld [vmem:[#allocation8 + $0xb8] sm:$0xff]  ;;  %v623_v47 = vld [vmem:[#allocation8 + $0xb0] sm:$0xff]  ;;  %p1305_p9 = pnand %p1304_p7, %p1655_p10 }
  0x8f   : > { %993 = vmatpush3.msra.mxu0 %v434_v13  ;;  %1028 = vmatpush3.msra.mxu1 %v418_v14  ;;  %v622_v48 = vld [vmem:[#allocation8 + $0xa8] sm:$0xff]  ;;  %v621_v49 = vld [vmem:[#allocation8 + $0xa0] sm:$0xff]  ;;  %v620_v50 = vld [vmem:[#allocation8 + $0x98] sm:$0xff]  ;;  %p1312_p5 = por %p1311_p1, %p1310_p0 }
  0x90   : > { %994 = vmatprep.subr.mxu0 %v1475_v0  ;;  %1029 = vmatprep.subr.mxu1 %v1475_v0  ;;  %v619_v51 = vld [vmem:[#allocation8 + $0x90] sm:$0xff]  ;;  %v618_v52 = vld [vmem:[#allocation8 + $0x88] sm:$0xff]  ;;  %v617_v53 = vld [vmem:[#allocation8 + $0x80] sm:$0xff]  ;;  %p1306_p8 = pneg %p1305_p9 }
  0x91   : > { %995 = vmatpush3.msra.mxu0 %v433_v15  ;;  %1030 = vmatpush3.msra.mxu1 %v417_v16  ;;  %v616_v54 = vld [vmem:[#allocation8 + $0x78] sm:$0xff]  ;;  %v615_v55 = vld [vmem:[#allocation8 + $0x70] sm:$0xff]  ;;  %v614_v56 = vld [vmem:[#allocation8 + $0x68] sm:$0xff] }
  0x92   : > { %996 = vmatprep.subr.mxu0 %v1475_v0  ;;  %1031 = vmatprep.subr.mxu1 %v1475_v0  ;;  %v613_v57 = vld [vmem:[#allocation8 + $0x60] sm:$0xff]  ;;  %v612_v58 = vld [vmem:[#allocation8 + $0x58] sm:$0xff]  ;;  %v611_v59 = vld [vmem:[#allocation8 + $0x50] sm:$0xff]  ;;  %p1313_p12 = pnand %p1312_p5, %p1306_p8 }
  0x93   : > { %997 = vmatpush3.msra.mxu0 %v432_v17  ;;  %1032 = vmatpush3.msra.mxu1 %v416_v18  ;;  %v610_v60 = vld [vmem:[#allocation8 + $0x48] sm:$0xff]  ;;  %v609_v61 = vld [vmem:[#allocation8 + $0x40] sm:$0xff]  ;;  %v608_v62 = vld [vmem:[#allocation8 + $0x38] sm:$0xff] }
  0x94   : > { %998 = vmatprep.subr.mxu0 %v1475_v0  ;;  %1033 = vmatprep.subr.mxu1 %v1475_v0  ;;  %v607_v63 = vld [vmem:[#allocation8 + $0x30] sm:$0xff]  ;;  %v605_v1 = vld [vmem:[#allocation8 + $0x20] sm:$0xff]  ;;  %v604_v2 = vld [vmem:[#allocation8 + $0x18] sm:$0xff] }
  0x95   : > { %999 = vmatpush3.msra.mxu0 %v431_v19  ;;  %1034 = vmatpush3.msra.mxu1 %v415_v20  ;;  %v603_v3 = vld [vmem:[#allocation8 + $0x10] sm:$0xff]  ;;  %v602_v4 = vld [vmem:[#allocation8 + $0x8] sm:$0xff]  ;;  %v601_v5 = vld [vmem:[#allocation8] sm:$0xff] }
  0x96   : > { %1000 = vmatprep.subr.mxu0 %v1475_v0  ;;  %1035 = vmatprep.subr.mxu1 %v1475_v0  ;;  %v936_v8 = vld [vmem:[%s1906_s3] ss:$0 sm:$0xff] }
  0x97   : > { %1001 = vmatpush3.msra.mxu0 %v430_v21  ;;  %1036 = vmatpush3.msra.mxu1 %v414_v22 }
  0x98   : > { %1002 = vmatprep.subr.mxu0 %v1475_v0  ;;  %1037 = vmatprep.subr.mxu1 %v1475_v0 }
  0x99   : > { %1003 = vmatpush3.msra.mxu0 %v429_v23  ;;  %1038 = vmatpush3.msra.mxu1 %v413_v24  ;;  %v635_v24 = vlaneseq }
  0x9a   : > { %1004 = vmatprep.subr.mxu0 %v1475_v0  ;;  %1039 = vmatprep.subr.mxu1 %v1475_v0 }
  0x9b   : > { %1005 = vmatpush3.msra.mxu0 %v428_v25  ;;  %1040 = vmatpush3.msra.mxu1 %v412_v26  ;;  %v636_v25 = vshrl.u32 %v635_v24, 7 }
  0x9c   : > { %1006 = vmatprep.subr.mxu0 %v1475_v0  ;;  %1041 = vmatprep.subr.mxu1 %v1475_v0 }
  0x9d   : > { %1007 = vmatpush3.msra.mxu0 %v427_v29  ;;  %1042 = vmatpush3.msra.mxu1 %v411_v30  ;;  %v637_v26 = vsub.s32 0, %v636_v25  ;;  %v641_v28 = vsub.s32 1, %v636_v25 }
  0x9e   : > { %1008 = vmatprep.subr.mxu0 %v1475_v0  ;;  %1043 = vmatprep.subr.mxu1 %v1475_v0 }
  0x9f   : > { %1009 = vmatpush3.msra.mxu0 %v426_v33  ;;  %1044 = vmatpush3.msra.mxu1 %v410_v34 }
  0xa0   : > { %1010 = vmatprep.subr.mxu0 %v1475_v0  ;;  %1045 = vmatprep.subr.mxu1 %v1475_v0 }
  0xa1   : > { %1011 = vmatpush3.msra.mxu0 %v425_v35  ;;  %1046 = vmatpush3.msra.mxu1 %v409_v36 }
  0xa2   : > { %1013 = vmatmul.mubr.f32.vlgmr.msra.gmra.mxu0 %v1791_v37  ;;  %1048 = vmatmul.mubr.f32.vlgmr.msra.gmra.mxu1 %v399_v27  ;;  %v633_v27 = vld [vmem:[%s1955_s23] sm:$0x3] }
  0xa3   : > { %709 = vmatprep.mubr.f32.mxu0 %v1475_v0  ;;  %645 = vmatprep.subr.mxu0 %v632_v38  ;;  %v606_v0 = vld [vmem:[#allocation8 + $0x28] sm:$0xff]  ;;  %v638_v29 = vrot.slane %v633_v27, %v637_v26  ;;  %v642_v30 = vrot.slane %v633_v27, %v641_v28 }
  0xa4   : > { %646 = vmatpush1.msra.mxu0 %v631_v39 }
  0xa5   : > { %647 = vmatprep.subr.mxu0 %v630_v40 }
  0xa6   : > { %648 = vmatpush1.msra.mxu0 %v629_v41 }
  0xa7   : > { %649 = vmatprep.subr.mxu0 %v628_v42 }
  0xa8   : > { %650 = vmatpush1.msra.mxu0 %v627_v43 }
  0xa9   : > { %651 = vmatprep.subr.mxu0 %v626_v44 }
  0xaa   : > { %652 = vmatpush1.msra.mxu0 %v625_v45 }
  0xab   : > { %653 = vmatprep.subr.mxu0 %v624_v46 }
  0xac   : > { %654 = vmatpush1.msra.mxu0 %v623_v47 }
  0xad   : > { %655 = vmatprep.subr.mxu0 %v622_v48 }
  0xae   : > { %656 = vmatpush1.msra.mxu0 %v621_v49 }
  0xaf   : > { %657 = vmatprep.subr.mxu0 %v620_v50 }
  0xb0   : > { %658 = vmatpush1.msra.mxu0 %v619_v51 }
  0xb1   : > { %659 = vmatprep.subr.mxu0 %v618_v52 }
  0xb2   : > { %660 = vmatpush1.msra.mxu0 %v617_v53 }
  0xb3   : > { %661 = vmatprep.subr.mxu0 %v616_v54 }
  0xb4   : > { %662 = vmatpush1.msra.mxu0 %v615_v55 }
  0xb5   : > { %663 = vmatprep.subr.mxu0 %v614_v56 }
  0xb6   : > { %664 = vmatpush1.msra.mxu0 %v613_v57 }
  0xb7   : > { %665 = vmatprep.subr.mxu0 %v612_v58 }
  0xb8   : > { %666 = vmatpush1.msra.mxu0 %v611_v59 }
  0xb9   : > { %667 = vmatprep.subr.mxu0 %v610_v60 }
  0xba   : > { %668 = vmatpush1.msra.mxu0 %v609_v61 }
  0xbb   : > { %669 = vmatprep.subr.mxu0 %v608_v62 }
  0xbc   : > { %670 = vmatpush1.msra.mxu0 %v607_v63 }
  0xbd   : > { %671 = vmatprep.subr.mxu0 %v606_v0 }
  0xbe   : > { %672 = vmatpush1.msra.mxu0 %v605_v1 }
  0xbf   : > { %673 = vmatprep.subr.mxu0 %v604_v2 }
  0xc0   : > { %674 = vmatpush1.msra.mxu0 %v603_v3 }
  0xc1   : > { %675 = vmatprep.subr.mxu0 %v602_v4 }
  0xc2   : > { %676 = vmatpush1.msra.mxu0 %v601_v5 }
 0x162   : > { %v507_v6 = vpop.f32.mrf.mxu0  ;;  %v577_v7 = vpop.f32.mrf.mxu1 }
 0x163   : > { %v578_v9 = vadd.f32 %v577_v7, %v507_v6 }
 0x164   : > { %v1014_v10 = vpop.f32.mrf.mxu0  ;;  %v1049_v11 = vpop.f32.mrf.mxu1 }
 0x165   : > { %v588_v12 = vadd.f32 %v936_v8, %v578_v9 }
 0x167   : > { %v937_v13 = vclamps-f32 %v588_v12, 20.0 }
 0x169   : > { %v591_v14 = vsub.f32 0.0, %v937_v13 }
 0x16b   : > { %v592_v15 = vmul.f32 1.442695, %v591_v14 }
 0x16d   : > { %1190 = vpow2.f32 %v592_v15 }
 0x17a   : > { %v1191_v16 = vpop.eup %1190 }
 0x17b   : > { %v594_v17 = vmul.f32 %v1191_v16, %v1191_v16  ;;  %v597_v19 = vadd.f32 1.0, %v1191_v16 }
 0x17d   : > { %v596_v18 = vadd.f32 1.0, %v594_v17  ;;  %v595_v21 = vsub.f32 1.0, %v594_v17 }
 0x17f   : > { %v598_v20 = vmul.f32 %v597_v19, %v596_v18 }
 0x181   : > { %1192 = vrcp.f32 %v598_v20 }
 0x18e   : > { %v1193_v22 = vpop.eup %1192 }
 0x18f   : > { %v600_v23 = vmul.f32 %v1193_v22, %v595_v21 }
 0x191   : > { %710 = vmatmul.mubr.f32.vlgmr.msra.gmra.mxu0 %v600_v23 }
 0x251   : > { %v711_v31 = vpop.f32.mrf.mxu0 }
 0x252   : > { %v712_v32 = vadd.f32 %v711_v31, %v638_v29 }
 0x253   : > { %v713_v33 = vpop.f32.mrf.mxu0 }
 0x254   : > { %716 = vst [vmem:[%s390_s17] sm:$0xff] %v712_v32  ;;  %v714_v34 = vadd.f32 %v713_v33, %v642_v30 }
 0x255   : > { %1316 = shalt.err (!%p1313_p12)
}
 0x256   : > { %s1317_s23 = scalar_lea.hbm %s1814_s7, 128  ;;  %s1321_s21 = scalar_lea.hbm %s1957_s14, 512 }
 0x257   : > { %p1318_p4 = scmp.ne.s32.totalorder %s1814_s7, %s1317_s23  ;;  %p1322_p2 = scmp.lt.s32.totalorder %s1814_s7, %s1957_s14 }
 0x258   : > { %p1323_p6 = scmp.lt.s32.totalorder %s1321_s21, %s1317_s23 }
 0x259   : > { %p1319_p13 = pnand %p1318_p4, %p1655_p10 }
 0x25a   : > { %p1324_p11 = por %p1323_p6, %p1322_p2 }
 0x25b   : > { %p1320_p3 = pneg %p1319_p13 }
 0x25d   : > { %p1325_p7 = pnand %p1324_p11, %p1320_p3 }
 0x25f   : > { %1328 = shalt.err (!%p1325_p7)
}
 0x260   : > { %1063 = dma.vmem_to_hbm [thread:$0]  (%p1655_p10), %s1816_s13, 128, %s1814_s7, %s720_s20   ;;  %v717_v35 = vadd.f32 %v714_v34, %v1791_v37 }
 0x261   : > { %s1958_s6 = sld [smem:[#allocation30_spill]]  ;;  %s1959_s23 = scalar_lea.vmem [#allocation11], %s1730_s18 }
 0x262   : > { %718 = vst [vmem:[%s1959_s23] sm:$0xff] %v717_v35  ;;  %s725_s17 = scalar_lea.sflag [#allocation12], %s1727_s8  ;;  %s1329_s19 = scalar_lea.vmem %s756_s15, 128 }
 0x263   : > { %p1330_p9 = scmp.ne.s32.totalorder %s756_s15, %s1329_s19  ;;  %s1478_s21 = smov [#allocation11]  }
 0x264   : > { %s1333_s2 = sshll.u32 %s1478_s21, 4  ;;  %s1334_s2 = int_to_ptr.vmem [resolvable:$false] %s1333_s2 }
 0x265   : > { %p1331_p8 = pnand %p1330_p9, %p1655_p10  ;;  %s1335_s13 = scalar_lea.vmem %s1334_s2, 256 }
 0x266   : > { %p1336_p1 = scmp.lt.s32.totalorder %s756_s15, %s1334_s2  ;;  %p1337_p5 = scmp.lt.s32.totalorder %s1335_s13, %s1329_s19 }
 0x267   : > { %s753_s24 = scalar_lea.hbm %s1958_s6, %s941_s10  ;;  %p1332_p0 = pneg %p1331_p8 }
 0x268   : > { %p1338_p12 = por %p1337_p5, %p1336_p1 }
 0x26a   : > { %p1339_p4 = pnand %p1338_p12, %p1332_p0 }
 0x26c   : > { %1342 = shalt.err (!%p1339_p4)
}
 0x26d   : > { %s1343_s16 = scalar_lea.hbm %s753_s24, 128  ;;  %s1347_s10 = scalar_lea.hbm %s1958_s6, 512 }
 0x26e   : > { %p1344_p13 = scmp.ne.s32.totalorder %s753_s24, %s1343_s16  ;;  %p1348_p6 = scmp.lt.s32.totalorder %s753_s24, %s1958_s6 }
 0x26f   : > { %p1349_p11 = scmp.lt.s32.totalorder %s1347_s10, %s1343_s16 }
 0x270   : > { %p1345_p3 = pnand %p1344_p13, %p1655_p10 }
 0x271   : > { %p1350_p7 = por %p1349_p11, %p1348_p6 }
 0x272   : > { %p1346_p2 = pneg %p1345_p3 }
 0x274   : > { %p1351_p9 = pnand %p1350_p7, %p1346_p2 }
 0x276   : > { %1354 = shalt.err (!%p1351_p9)
}
 0x277   : > { %1064 = dma.vmem_to_hbm [thread:$0]  (%p1655_p10), %s756_s15, 128, %s753_s24, %s725_s17  }
 0x278 PF: > { %p1093_p8 = scmp.ge.s32.totalorder %s1465_s11, 2  ;;  %s767_s30 = sand.u32 1, %s1437_s27  }
 0x279   : > { %p1960_p0 = scmp.ne.s32.totalorder %s1942_s22, 0  ;;  %s768_s12 = scalar_lea.sflag [#allocation4], %s767_s30 }
 0x27b   : > { %p1082_p1 = pnand %p1093_p8, %p1960_p0 }
 0x27d   : > { %p1083_p5 = pneg %p1082_p1 }
 0x27f   : > { %1416 = dma.done.wait (%p1083_p5), %s768_s12, 128  }
 0x280   : > { %1418 = vsyncadd (%p1083_p5), %s768_s12, 4294967168  ;;  %s777_s23 = scalar_lea.sflag [#allocation12], %s767_s30 }
 0x281   : > { %1420 = dma.done.wait (%p1083_p5), %s777_s23, 128  }
 0x282   : > { %1422 = vsyncadd (%p1083_p5), %s777_s23, 4294967168  ;;  %s31_s11 = sadd.s32 1, %s1465_s11   ;;  %s1961_s5 = sld [smem:[#allocation25_spill]] }
 0x283   : > { %p28_p12 = scmp.ge.s32.totalorder %s31_s11, 6   ;;  %s1962_s8 = sld [smem:[#allocation21_spill]] }
 0x284   : > { %s1963_s22 = sld [smem:[#allocation22_spill]]  ;;  %s1965_s24 = smov %s1429_s25 }
 0x285   : > { %s1964_s10 = sld [smem:[#allocation23_spill]]  ;;  %s1966_s25 = smov %s1433_s26 }
 0x286   : > { %s1967_s26 = smov %s1697_s4  ;;  %s1968_s27 = smov %s1441_s28 }
 0x287   : > { %s1969_s28 = smov %s1445_s29  ;;  %s1971_s30 = smov %s1457_s9 }
 0x288   : > { %s1970_s29 = smov %s1961_s5  ;;  %30 = sbr.rel (!%p28_p12) target bundleno = 20 (0x14), region = 127 }
 0x28a   : > { %s1972_s9 = smov %s1963_s22 }
 0x28d   :  { %782 = vsyncpa [#allocation3], 1 }
 0x28e   :  { %784 = vsyncpa [#allocation3 + $0x1], 1 }
 0x28f   :  { %785 = vsyncpa [#allocation6], 1 }
 0x290   :  { %787 = vsyncpa [#allocation6 + $0x1], 1 }
 0x291   :  { %788 = vsyncpa [#allocation9], 1 }
 0x292   :  { %789 = vsyncpa [#allocation4], 1 }
 0x293   :  { %791 = vsyncpa [#allocation4 + $0x1], 1 }
 0x294   :  { %792 = vsyncpa [#allocation12], 1 }
 0x295   :  { %794 = vsyncpa [#allocation12 + $0x1], 1 }

</bundles_post_ra>
